<compile_context>
chip_gen: v7x
topology: tpu7x:2x2x1
jax: 0.10.0
libtpu: 0.0.40
codegen_flags: <defaults>
</compile_context>

<pallas_src>
import jax
import jax.numpy as jnp
import numpy as np
from jax.experimental import pallas as pl
from jax.experimental.pallas import tpu as pltpu

_LANE = 128
_PAD_LOGIT_KILLER = 1.0e30  # ||td||^2 for padded rows; c2 < 0 -> exp underflows to 0


def _round_up(x, m):
    return ((x + m - 1) // m) * m


# ---------------------------------------------------------------------------
# Kernel
# ---------------------------------------------------------------------------
def true_score_kernel(xt_ref, td_ref, td2_ref, c1_ref, c2_ref, invv_ref,
                      out_ref, m_sc, l_sc, acc_sc):
    # xt_ref  : (TB, Dp) f32  noisy samples (flattened, D-padded), resident over n
    # td_ref  : (TN, Dp) f32  streamed training-data tile
    # td2_ref : (1, TN)  f32  ||td_i||^2 (padded rows poisoned to 1e30)
    # c1_ref  : (TB, 1)  f32  sqrt(abar)/(1-abar)
    # c2_ref  : (TB, 1)  f32  -abar/(2(1-abar))   (< 0 strictly)
    # invv_ref: (TB, 1)  f32  1/(1-abar)
    # out_ref : (TB, Dp) f32  true score, written on the last n tile
    n_idx = pl.program_id(1)

    @pl.when(n_idx == 0)
    def _():
        m_sc[...] = jnp.full_like(m_sc, -jnp.inf)
        l_sc[...] = jnp.zeros_like(l_sc)
        acc_sc[...] = jnp.zeros_like(acc_sc)

    xt = xt_ref[...]                                     # (TB, Dp)
    td = td_ref[...]                                     # (TN, Dp)
    c1 = c1_ref[...]                                     # (TB, 1)

    # <xt, td> contracting over D without an explicit td transpose (MXU).
    dot = jax.lax.dot_general(
        xt, td,
        dimension_numbers=(((1,), (1,)), ((), ())),
        preferred_element_type=jnp.float32)              # (TB, TN)

    # logits = -||xt - sab*td||^2/(2 var) up to a per-row constant:
    #   logits ~ c1*<xt,td> + c2*||td||^2.
    # Padded rows: dot == 0 and td2 == 1e30 with c2 < 0 -> logits ~ -1e30,
    # so exp() underflows to exactly 0 (no mask needed).
    logits = c1 * dot + c2_ref[...] * td2_ref[...]       # (TB, TN)

    # Online softmax update over the training-set tiles.
    m_prev = m_sc[...]
    m_new = jnp.maximum(m_prev, jnp.max(logits, axis=-1, keepdims=True))
    alpha = jnp.exp(m_prev - m_new)
    p = jnp.exp(logits - m_new)                          # (TB, TN)
    l_sc[...] = alpha * l_sc[...] + jnp.sum(p, axis=-1, keepdims=True)
    # TODO(synk): bf16 p@td (f32 accum) would halve MXU cycles but fails the
    # 2e-3 tolerance at small t where 1/var ~ 1e4 amplifies mean error.
    acc_sc[...] = alpha * acc_sc[...] + jnp.dot(
        p, td, preferred_element_type=jnp.float32)       # (TB, Dp)  MXU
    m_sc[...] = m_new

    @pl.when(n_idx == pl.num_programs(1) - 1)
    def _():
        l = l_sc[...]
        r = pl.reciprocal(l, approx=True)                # EUP seed
        r = r * (2.0 - l * r)                            # one Newton step -> f32 accurate
        mean = acc_sc[...] * r                           # posterior mean over train data
        # score = (sab*mean - xt)/var = c1*mean - xt/var
        out_ref[...] = c1 * mean - xt * invv_ref[...]


# ---------------------------------------------------------------------------
# Tiling / VMEM budgeting
# ---------------------------------------------------------------------------
def _vmem_budget():
    cap = 64 * 1024 * 1024                 # conservative fallback (v7x per-core VMEM)
    try:
        info = pltpu.get_tpu_info()
        cap = int(getattr(info, "vmem_capacity_bytes", cap)) or cap
    except Exception:
        pass
    vmem_limit = int(cap * 0.75)           # ~48 MiB on v7x, ~96 MiB on v5e/v6e
    tile_budget = int(cap * 0.55)          # sizing budget; slack for compiler temps
    return vmem_limit, tile_budget


def _footprint(tb, tn, d_pad):
    td_bufs = 2 * tn * d_pad * 4 + 2 * tn * 4     # td + ||td||^2 double buffers
    xt_out = 4 * tb * d_pad * 4                   # xt + out double buffers
    scratch = tb * d_pad * 4 + 3 * tb * 4         # acc + m/l accumulators
    temps = 3 * tb * tn * 4                       # logits / p live temporaries
    return td_bufs + xt_out + scratch + temps


def _choose_tn(n, d_pad, budget):
    """Train-data tile: largest power-of-two multiple of 128 that fits VMEM,
    capped so we never pad N by more than one tile."""
    n_min = _round_up(n, _LANE)
    tn = min(256, n_min)
    max_tn = min(4096, n_min)
    tb_nominal = 256                               # conservative room for batch tile
    while tn * 2 <= max_tn and _footprint(tb_nominal, tn * 2, d_pad) <= budget:
        tn *= 2
    return tn


def _choose_tb(batch, tn, d_pad, budget):
    """Batch tile: multiple-of-8 divisor of B (or the full batch) that fits
    VMEM; leave >=2 blocks on the parallel axis when B >= 16 (megacore)."""
    cands = [c for c in range(min(batch, 256), 0, -1)
             if batch % c == 0 and (c % 8 == 0 or c == batch)]
    for c in cands:
        if batch >= 16 and batch // c < 2:
            continue
        if _footprint(c, tn, d_pad) <= budget:
            return c
    return cands[-1]


# ---------------------------------------------------------------------------
# Wrapper (static preprocessing hoisted to construction time)
# ---------------------------------------------------------------------------
def make_ddpm_true_score(train_data, beta):
    """Returns score_fn(xt, t) == DDPMTrue(train_data, beta).forward(xt, t)."""
    n = train_data.shape[0]
    d = int(np.prod(train_data.shape[1:]))
    d_pad = _round_up(d, _LANE)                    # lane-dense last dim for any C*H*W

    vmem_limit, tile_budget = _vmem_budget()
    tn = _choose_tn(n, d_pad, tile_budget)
    n_pad = _round_up(n, tn)

    # Hoisted static preprocessing: flatten, pad D and N, ||td||^2 with padded
    # rows poisoned so no in-kernel mask is needed.
    td_flat = jnp.asarray(train_data, jnp.float32).reshape(n, d)
    if d_pad != d:
        td_flat = jnp.pad(td_flat, ((0, 0), (0, d_pad - d)))
    td2 = jnp.sum(td_flat * td_flat, axis=-1)
    if n_pad != n:
        td_flat = jnp.pad(td_flat, ((0, n_pad - n), (0, 0)))
        td2 = jnp.pad(td2, ((0, n_pad - n),), constant_values=_PAD_LOGIT_KILLER)
    td2 = td2.reshape(1, n_pad)

    alpha_bar = jnp.cumprod(1.0 - jnp.asarray(beta, jnp.float32))

    def score_fn(xt, t):
        batch = xt.shape[0]
        tb = _choose_tb(batch, tn, d_pad, tile_budget)
        grid = (batch // tb, n_pad // tn)

        xt_flat = jnp.asarray(xt, jnp.float32).reshape(batch, d)
        if d_pad != d:
            xt_flat = jnp.pad(xt_flat, ((0, 0), (0, d_pad - d)))

        # Schedule gather + per-row constants (tiny JAX glue).
        ab = alpha_bar[t].reshape(batch, 1)
        sab = jnp.sqrt(ab)
        inv_var = 1.0 / (1.0 - ab)
        c1 = sab * inv_var             # scales <xt,td> in logits & posterior mean
        c2 = -0.5 * ab * inv_var       # scales ||td||^2 in logits (strictly < 0)

        cost = pl.CostEstimate(
            flops=int(4 * batch * n_pad * d_pad),
            transcendentals=int(batch * n_pad),
            bytes_accessed=int(grid[0] * n_pad * d_pad * 4 + 3 * batch * d_pad * 4),
        )

        out = pl.pallas_call(
            true_score_kernel,
            out_shape=jax.ShapeDtypeStruct((batch, d_pad), jnp.float32),
            grid_spec=pltpu.PrefetchScalarGridSpec(
                num_scalar_prefetch=0,
                grid=grid,
                in_specs=[
                    pl.BlockSpec((tb, d_pad), lambda b, k: (b, 0)),  # xt (resident over n)
                    pl.BlockSpec((tn, d_pad), lambda b, k: (k, 0)),  # td (streamed)
                    pl.BlockSpec((1, tn), lambda b, k: (0, k)),      # ||td||^2 tile
                    pl.BlockSpec((tb, 1), lambda b, k: (b, 0)),      # c1
                    pl.BlockSpec((tb, 1), lambda b, k: (b, 0)),      # c2
                    pl.BlockSpec((tb, 1), lambda b, k: (b, 0)),      # 1/var
                ],
                out_specs=pl.BlockSpec((tb, d_pad), lambda b, k: (b, 0)),
                scratch_shapes=[
                    pltpu.VMEM((tb, 1), jnp.float32),      # running max m
                    pltpu.VMEM((tb, 1), jnp.float32),      # running denom l
                    pltpu.VMEM((tb, d_pad), jnp.float32),  # running weighted sum
                ],
            ),
            compiler_params=pltpu.CompilerParams(
                dimension_semantics=("parallel", "arbitrary"),
                vmem_limit_bytes=vmem_limit,
            ),
            cost_estimate=cost,
        )(xt_flat, td_flat, td2, c1, c2, inv_var)

        if d_pad != d:
            out = out[:, :d]
        return out.reshape(xt.shape)

    return score_fn


# ---------------------------------------------------------------------------
# Pure-JAX reference (direct-difference form) for correctness checking
# ---------------------------------------------------------------------------
def ddpm_true_score_ref(xt, t, train_data, beta):
    B = xt.shape[0]
    N = train_data.shape[0]
    D = int(np.prod(xt.shape[1:]))
    xtf = xt.reshape(B, D).astype(jnp.float32)
    tdf = train_data.reshape(N, D).astype(jnp.float32)
    alpha_bar = jnp.cumprod(1.0 - beta.astype(jnp.float32))
    ab = alpha_bar[t].reshape(B, 1)
    sab = jnp.sqrt(ab)
    var = 1.0 - ab
    diff = xtf[:, None, :] - sab[:, :, None] * tdf[None, :, :]       # (B, N, D)
    dist2 = jnp.sum(diff * diff, axis=-1)                            # (B, N)
    w = jax.nn.softmax(-dist2 / (2.0 * var), axis=-1)                # (B, N)
    mean = w @ tdf                                                   # (B, D)
    score = (sab * mean - xtf) / var
    return score.reshape(xt.shape)


if __name__ == "__main__":
    key = jax.random.PRNGKey(0)
    k1, k2, k3 = jax.random.split(key, 3)

    # Small shapes consistent with the module: images (B, C, H, W).
    B, C, H, W = 8, 2, 8, 8          # D = C*H*W = 128
    N = 1000                         # training points (ragged vs TN -> exercises padding)
    T = 100                          # diffusion timesteps

    train_data = jax.random.normal(k1, (N, C, H, W), dtype=jnp.float32)
    xt = jax.random.normal(k2, (B, C, H, W), dtype=jnp.float32)
    t = jax.random.randint(k3, (B,), 0, T, dtype=jnp.int32)

    # Default DDPM linear beta schedule, built deterministically in-script.
    beta = jnp.linspace(1e-4, 0.02, T, dtype=jnp.float32)

    score_fn = make_ddpm_true_score(train_data, beta)
    score = jax.block_until_ready(score_fn(xt, t))

    score_ref = ddpm_true_score_ref(xt, t, train_data, beta)
    np.testing.assert_allclose(
        np.asarray(score), np.asarray(score_ref), rtol=2e-3, atol=2e-3
    )

    print("KERNEL_OK")
</pallas_src>

<mosaic_0001>
module attributes {stable_mosaic.version = 11 : i64} {
  func.func @true_score_kernel(%arg0: i32, %arg1: i32, %arg2: memref<8x128xf32, #tpu.memory_space<vmem>>, %arg3: memref<1024x128xf32, #tpu.memory_space<vmem>>, %arg4: memref<1x1024xf32, #tpu.memory_space<vmem>>, %arg5: memref<8x1xf32, #tpu.memory_space<vmem>>, %arg6: memref<8x1xf32, #tpu.memory_space<vmem>>, %arg7: memref<8x1xf32, #tpu.memory_space<vmem>>, %arg8: memref<8x128xf32, #tpu.memory_space<vmem>>, %arg9: memref<8x1xf32, #tpu.memory_space<vmem>>, %arg10: memref<8x1xf32, #tpu.memory_space<vmem>>, %arg11: memref<8x128xf32, #tpu.memory_space<vmem>>) attributes {dimension_semantics = [#tpu.dimension_semantics<parallel>, #tpu.dimension_semantics<arbitrary>], iteration_bounds = array<i64: 1, 1>, scalar_prefetch = 0 : i64, scratch_operands = 3 : i64, tpu.core_type = #tpu.core_type<tc>, window_params = [{transform_indices = @transform_0, window_bounds = array<i64: 8, 128>}, {transform_indices = @transform_1, window_bounds = array<i64: 1024, 128>}, {transform_indices = @transform_2, window_bounds = array<i64: 1, 1024>}, {transform_indices = @transform_3, window_bounds = array<i64: 8, 1>}, {transform_indices = @transform_4, window_bounds = array<i64: 8, 1>}, {transform_indices = @transform_5, window_bounds = array<i64: 8, 1>}, {transform_indices = @transform_6, window_bounds = array<i64: 8, 128>}]} {
    %c0_i32 = arith.constant 0 : i32
    %0 = arith.cmpi eq, %arg1, %c0_i32 : i32
    %1 = arith.extui %0 : i1 to i32
    %c0_i32_0 = arith.constant 0 : i32
    %2 = arith.cmpi ne, %1, %c0_i32_0 : i32
    scf.if %2 {
      %cst_27 = arith.constant 0xFF800000 : f32
      %40 = vector.broadcast %cst_27 : f32 to vector<8x1xf32>
      %c0_28 = arith.constant 0 : index
      %c0_29 = arith.constant 0 : index
      %41 = vector.load %arg9[%c0_28, %c0_29] : memref<8x1xf32, #tpu.memory_space<vmem>>, vector<8x1xf32>
      tpu.vector_store %arg9[%c0_28, %c0_29], %40 {strides = array<i32>} : memref<8x1xf32, #tpu.memory_space<vmem>>, vector<8x1xf32>,
      %cst_30 = arith.constant 0.000000e+00 : f32
      %42 = vector.broadcast %cst_30 : f32 to vector<8x1xf32>
      %c0_31 = arith.constant 0 : index
      %c0_32 = arith.constant 0 : index
      %43 = vector.load %arg10[%c0_31, %c0_32] : memref<8x1xf32, #tpu.memory_space<vmem>>, vector<8x1xf32>
      tpu.vector_store %arg10[%c0_31, %c0_32], %42 {strides = array<i32>} : memref<8x1xf32, #tpu.memory_space<vmem>>, vector<8x1xf32>,
      %cst_33 = arith.constant 0.000000e+00 : f32
      %44 = vector.broadcast %cst_33 : f32 to vector<8x128xf32>
      %c0_34 = arith.constant 0 : index
      %c0_35 = arith.constant 0 : index
      %45 = vector.load %arg11[%c0_34, %c0_35] : memref<8x128xf32, #tpu.memory_space<vmem>>, vector<8x128xf32>
      tpu.vector_store %arg11[%c0_34, %c0_35], %44 {strides = array<i32>} : memref<8x128xf32, #tpu.memory_space<vmem>>, vector<8x128xf32>,
    } else {
    }
    %c0 = arith.constant 0 : index
    %c0_1 = arith.constant 0 : index
    %3 = vector.load %arg2[%c0, %c0_1] : memref<8x128xf32, #tpu.memory_space<vmem>>, vector<8x128xf32>
    %c0_2 = arith.constant 0 : index
    %c0_3 = arith.constant 0 : index
    %4 = vector.load %arg3[%c0_2, %c0_3] : memref<1024x128xf32, #tpu.memory_space<vmem>>, vector<1024x128xf32>
    %c0_4 = arith.constant 0 : index
    %c0_5 = arith.constant 0 : index
    %5 = vector.load %arg5[%c0_4, %c0_5] : memref<8x1xf32, #tpu.memory_space<vmem>>, vector<8x1xf32>
    %cst = arith.constant dense<0.000000e+00> : vector<8x1024xf32>
    %6 = tpu.matmul %3, %4, %cst {dimension_numbers = #tpu.dot_dimension_numbers<[1], [1], [0], [0], [0, 0, 1, 0], [], []>} : vector<8x128xf32>, vector<1024x128xf32>, vector<8x1024xf32> -> vector<8x1024xf32>
    %7 = vector.broadcast %5 : vector<8x1xf32> to vector<8x1024xf32>
    %8 = arith.mulf %7, %6 : vector<8x1024xf32>
    %c0_6 = arith.constant 0 : index
    %c0_7 = arith.constant 0 : index
    %9 = vector.load %arg6[%c0_6, %c0_7] : memref<8x1xf32, #tpu.memory_space<vmem>>, vector<8x1xf32>
    %c0_8 = arith.constant 0 : index
    %c0_9 = arith.constant 0 : index
    %10 = vector.load %arg4[%c0_8, %c0_9] : memref<1x1024xf32, #tpu.memory_space<vmem>>, vector<1x1024xf32>
    %11 = vector.broadcast %9 : vector<8x1xf32> to vector<8x1024xf32>
    %12 = vector.broadcast %10 : vector<1x1024xf32> to vector<8x1024xf32>
    %13 = arith.mulf %11, %12 : vector<8x1024xf32>
    %14 = arith.addf %8, %13 : vector<8x1024xf32>
    %c0_10 = arith.constant 0 : index
    %c0_11 = arith.constant 0 : index
    %15 = vector.load %arg9[%c0_10, %c0_11] : memref<8x1xf32, #tpu.memory_space<vmem>>, vector<8x1xf32>
    %cst_12 = arith.constant dense<0xFF800000> : vector<8xf32>
    %16 = vector.multi_reduction <maximumf>, %14, %cst_12 [1] : vector<8x1024xf32> to vector<8xf32>
    %17 = vector.shape_cast %16 : vector<8xf32> to vector<8x1xf32>
    %18 = arith.maximumf %15, %17 : vector<8x1xf32>
    %19 = arith.subf %15, %18 : vector<8x1xf32>
    %20 = math.exp %19 : vector<8x1xf32>
    %21 = vector.broadcast %18 : vector<8x1xf32> to vector<8x1024xf32>
    %22 = arith.subf %14, %21 : vector<8x1024xf32>
    %23 = math.exp %22 : vector<8x1024xf32>
    %c0_13 = arith.constant 0 : index
    %c0_14 = arith.constant 0 : index
    %24 = vector.load %arg10[%c0_13, %c0_14] : memref<8x1xf32, #tpu.memory_space<vmem>>, vector<8x1xf32>
    %25 = arith.mulf %20, %24 : vector<8x1xf32>
    %cst_15 = arith.constant dense<0.000000e+00> : vector<8xf32>
    %26 = vector.multi_reduction <add>, %23, %cst_15 [1] : vector<8x1024xf32> to vector<8xf32>
    %27 = vector.shape_cast %26 : vector<8xf32> to vector<8x1xf32>
    %28 = arith.addf %25, %27 : vector<8x1xf32>
    %c0_16 = arith.constant 0 : index
    %c0_17 = arith.constant 0 : index
    %29 = vector.load %arg10[%c0_16, %c0_17] : memref<8x1xf32, #tpu.memory_space<vmem>>, vector<8x1xf32>
    tpu.vector_store %arg10[%c0_16, %c0_17], %28 {strides = array<i32>} : memref<8x1xf32, #tpu.memory_space<vmem>>, vector<8x1xf32>,
    %c0_18 = arith.constant 0 : index
    %c0_19 = arith.constant 0 : index
    %30 = vector.load %arg11[%c0_18, %c0_19] : memref<8x128xf32, #tpu.memory_space<vmem>>, vector<8x128xf32>
    %31 = vector.broadcast %20 : vector<8x1xf32> to vector<8x128xf32>
    %32 = arith.mulf %31, %30 : vector<8x128xf32>
    %cst_20 = arith.constant dense<0.000000e+00> : vector<8x128xf32>
    %33 = tpu.matmul %23, %4, %cst_20 {dimension_numbers = #tpu.dot_dimension_numbers<[1], [0], [0], [1], [0, 0, 1, 1], [], []>} : vector<8x1024xf32>, vector<1024x128xf32>, vector<8x128xf32> -> vector<8x128xf32>
    %34 = arith.addf %32, %33 : vector<8x128xf32>
    %c0_21 = arith.constant 0 : index
    %c0_22 = arith.constant 0 : index
    %35 = vector.load %arg11[%c0_21, %c0_22] : memref<8x128xf32, #tpu.memory_space<vmem>>, vector<8x128xf32>
    tpu.vector_store %arg11[%c0_21, %c0_22], %34 {strides = array<i32>} : memref<8x128xf32, #tpu.memory_space<vmem>>, vector<8x128xf32>,
    %c0_23 = arith.constant 0 : index
    %c0_24 = arith.constant 0 : index
    %36 = vector.load %arg9[%c0_23, %c0_24] : memref<8x1xf32, #tpu.memory_space<vmem>>, vector<8x1xf32>
    tpu.vector_store %arg9[%c0_23, %c0_24], %18 {strides = array<i32>} : memref<8x1xf32, #tpu.memory_space<vmem>>, vector<8x1xf32>,
    %c0_i32_25 = arith.constant 0 : i32
    %37 = arith.cmpi eq, %arg1, %c0_i32_25 : i32
    %38 = arith.extui %37 : i1 to i32
    %c0_i32_26 = arith.constant 0 : i32
    %39 = arith.cmpi ne, %38, %c0_i32_26 : i32
    scf.if %39 {
      %c0_27 = arith.constant 0 : index
      %c0_28 = arith.constant 0 : index
      %40 = vector.load %arg10[%c0_27, %c0_28] : memref<8x1xf32, #tpu.memory_space<vmem>>, vector<8x1xf32>
      %41 = tpu.reciprocal %40 {approx = true} : vector<8x1xf32> -> vector<8x1xf32>
      %42 = arith.mulf %40, %41 : vector<8x1xf32>
      %cst_29 = arith.constant 2.000000e+00 : f32
      %43 = vector.broadcast %cst_29 : f32 to vector<8x1xf32>
      %44 = arith.subf %43, %42 : vector<8x1xf32>
      %45 = arith.mulf %41, %44 : vector<8x1xf32>
      %c0_30 = arith.constant 0 : index
      %c0_31 = arith.constant 0 : index
      %46 = vector.load %arg11[%c0_30, %c0_31] : memref<8x128xf32, #tpu.memory_space<vmem>>, vector<8x128xf32>
      %47 = vector.broadcast %45 : vector<8x1xf32> to vector<8x128xf32>
      %48 = arith.mulf %46, %47 : vector<8x128xf32>
      %49 = vector.broadcast %5 : vector<8x1xf32> to vector<8x128xf32>
      %50 = arith.mulf %49, %48 : vector<8x128xf32>
      %c0_32 = arith.constant 0 : index
      %c0_33 = arith.constant 0 : index
      %51 = vector.load %arg7[%c0_32, %c0_33] : memref<8x1xf32, #tpu.memory_space<vmem>>, vector<8x1xf32>
      %52 = vector.broadcast %51 : vector<8x1xf32> to vector<8x128xf32>
      %53 = arith.mulf %3, %52 : vector<8x128xf32>
      %54 = arith.subf %50, %53 : vector<8x128xf32>
      %c0_34 = arith.constant 0 : index
      %c0_35 = arith.constant 0 : index
      %55 = vector.load %arg8[%c0_34, %c0_35] : memref<8x128xf32, #tpu.memory_space<vmem>>, vector<8x128xf32>
      tpu.vector_store %arg8[%c0_34, %c0_35], %54 {strides = array<i32>} : memref<8x128xf32, #tpu.memory_space<vmem>>, vector<8x128xf32>,
    } else {
    }
    return
  }
  func.func @transform_0(%arg0: i32, %arg1: i32) -> (i32, i32) {
    %c0_i32 = arith.constant 0 : i32
    %c0_i32_0 = arith.constant 0 : i32
    return %arg0, %c0_i32 : i32, i32
  }
  func.func @transform_1(%arg0: i32, %arg1: i32) -> (i32, i32) {
    %c0_i32 = arith.constant 0 : i32
    %c0_i32_0 = arith.constant 0 : i32
    return %arg1, %c0_i32 : i32, i32
  }
  func.func @transform_2(%arg0: i32, %arg1: i32) -> (i32, i32) {
    %c0_i32 = arith.constant 0 : i32
    %c0_i32_0 = arith.constant 0 : i32
    return %c0_i32, %arg1 : i32, i32
  }
  func.func @transform_3(%arg0: i32, %arg1: i32) -> (i32, i32) {
    %c0_i32 = arith.constant 0 : i32
    %c0_i32_0 = arith.constant 0 : i32
    return %arg0, %c0_i32 : i32, i32
  }
  func.func @transform_4(%arg0: i32, %arg1: i32) -> (i32, i32) {
    %c0_i32 = arith.constant 0 : i32
    %c0_i32_0 = arith.constant 0 : i32
    return %arg0, %c0_i32 : i32, i32
  }
  func.func @transform_5(%arg0: i32, %arg1: i32) -> (i32, i32) {
    %c0_i32 = arith.constant 0 : i32
    %c0_i32_0 = arith.constant 0 : i32
    return %arg0, %c0_i32 : i32, i32
  }
  func.func @transform_6(%arg0: i32, %arg1: i32) -> (i32, i32) {
    %c0_i32 = arith.constant 0 : i32
    %c0_i32_0 = arith.constant 0 : i32
    return %arg0, %c0_i32 : i32, i32
  }
}

</mosaic_0001>

<bundles_post_ra>
// kernel: tpu_custom_call.1
= control target key start
LH: loop header
LB: loop body
LE: loop exit
PB: predicated region body
PF: predicated region fallthrough
CT: control target
= control target key end

     0   :  { %11 = vsyncpa [#allocation6], 0  ;;  %s1900_s0 = inlined_call_operand.vmem [shape: f32[8,128], index: 0, kind: input, shape index: {}]   ;;  %s1901_s1 = inlined_call_operand.hbm [shape: f32[1024,128], index: 1, kind: input, shape index: {}]   ;;  %s1902_s2 = inlined_call_operand.vmem [shape: f32[1,1024], index: 2, kind: input, shape index: {}]   ;;  %s1903_s3 = inlined_call_operand.vmem [shape: f32[8,1], index: 3, kind: input, shape index: {}]   ;;  %s1904_s4 = inlined_call_operand.vmem [shape: f32[8,1], index: 4, kind: input, shape index: {}]   ;;  %s1905_s5 = inlined_call_operand.vmem [shape: f32[8,1], index: 5, kind: input, shape index: {}]   ;;  %s1906_s6 = inlined_call_operand.hbm [shape: f32[8,128], index: 6, kind: output, shape index: {}]  }
   0x1   :  { %12 = vsyncpa [#allocation7], 0  ;;  %s1533_s21 = smov [#allocation5]   ;;  %s1485_s25 = scalar_lea.hbm %s1901_s1, 16384 }
   0x2   :  { %s20_s22 = sshll.u32 %s1533_s21, 4  ;;  %p1486_p0 = scmp.ne.s32.totalorder %s1901_s1, %s1485_s25  ;;  %s21_s22 = int_to_ptr.vmem [resolvable:$true] %s20_s22 }
   0x3   :  { %p1489_p1 = scmp.lt.u32.totalorder %s1485_s25, %s1901_s1 }
   0x5   :  { %p1491_p2 = pnand %p1489_p1, %p1486_p0 }
   0x7   :  { %1494 = shalt.err (!%p1491_p2)
}
   0x8   :  { %s1495_s30 = scalar_lea.vmem %s21_s22, 16384  ;;  %p1500_p4 = scmp.lt.s32.totalorder %s21_s22, %s21_s22 }
   0x9   :  { %p1496_p3 = scmp.ne.s32.totalorder %s21_s22, %s1495_s30  ;;  %p1501_p5 = scmp.lt.s32.totalorder %s1495_s30, %s1495_s30 }
   0xb   :  { %p1502_p6 = por %p1501_p5, %p1500_p4 }
   0xd   :  { %p1503_p7 = pnand %p1502_p6, %p1496_p3 }
   0xf   :  { %1506 = shalt.err (!%p1503_p7)
}
  0x10   :  { %s1534_s7 = smov 128   ;;  %s1535_s8 = smov 8  }
  0x11   :  { %26 = dma.hbm_to_vmem [thread:$0]  %s1901_s1, 16384, %s21_s22, [#allocation6], %s1534_s7, %s1534_s7, %s1535_s8  }
  0x12   :  { %1529 = dma.done.wait [#allocation6], 16384  }
  0x13   :  { %1530 = vsyncadd [#allocation6], 4294950912  ;;  %v63_v0 = vld [vmem:[#allocation5 + $0x80] sm:$0xff]  ;;  %v64_v1 = vld [vmem:[#allocation5 + $0x88] sm:$0xff]  ;;  %v1536_v21 = vmov 0   ;;  %vm42_vm0 = vcmask 7168  }
  0x14   :  { %v95_v2 = vld [vmem:[#allocation5 + $0x180] sm:$0xff]  ;;  %v1587_v3 = vpack.c.bf16 %v64_v1, %v63_v0  ;;  %v96_v4 = vld [vmem:[#allocation5 + $0x188] sm:$0xff]  ;;  %v65_v11 = vld [vmem:[#allocation5 + $0x90] sm:$0xff]  ;;  %1463 = vset.pattern.permute.xlu0 %v1536_v21  ;;  %1464 = vset.pattern.permute.xlu1 %v1536_v21 }
  0x15   :  { %v47_v5 = vld [vmem:[#allocation5] sm:$0xff]  ;;  %v48_v6 = vld [vmem:[#allocation5 + $0x8] sm:$0xff]  ;;  %v1589_v7 = vpack.c.bf16 %v96_v4, %v95_v2  ;;  %v66_v13 = vld [vmem:[#allocation5 + $0x98] sm:$0xff] }
  0x16   :  { %v1591_v8 = vpack.c.bf16 %v48_v6, %v47_v5  ;;  %v79_v9 = vld [vmem:[#allocation5 + $0x100] sm:$0xff]  ;;  %v80_v10 = vld [vmem:[#allocation5 + $0x108] sm:$0xff]  ;;  %1201 = vmatprep.subr.bf16.mxu0 %v1587_v3  ;;  %v97_v14 = vld [vmem:[#allocation5 + $0x190] sm:$0xff]  ;;  %v1598_v16 = vpack.c.bf16 %v66_v13, %v65_v11 }
  0x17   :  { %v1594_v12 = vpack.c.bf16 %v80_v10, %v79_v9  ;;  %v98_v15 = vld [vmem:[#allocation5 + $0x198] sm:$0xff]  ;;  %1233 = vmatprep.subr.bf16.mxu1 %v1589_v7  ;;  %v49_v18 = vld [vmem:[#allocation5 + $0x10] sm:$0xff]  ;;  %v67_v23 = vld [vmem:[#allocation5 + $0xa0] sm:$0xff] }
  0x18   :  { %1203 = vmatpush3.bf16.xpose.msra.mxu0 %v1591_v8  ;;  %v1600_v17 = vpack.c.bf16 %v98_v15, %v97_v14  ;;  %v50_v19 = vld [vmem:[#allocation5 + $0x18] sm:$0xff]  ;;  %v81_v20 = vld [vmem:[#allocation5 + $0x110] sm:$0xff]  ;;  %v68_v24 = vld [vmem:[#allocation5 + $0xa8] sm:$0xff] }
  0x19   :  { %1235 = vmatpush3.bf16.xpose.msra.mxu1 %v1594_v12  ;;  %1205 = vmatprep.subr.bf16.mxu0 %v1598_v16  ;;  %v82_v22 = vld [vmem:[#allocation5 + $0x118] sm:$0xff]  ;;  %v99_v25 = vld [vmem:[#allocation5 + $0x1a0] sm:$0xff]  ;;  %v100_v26 = vld [vmem:[#allocation5 + $0x1a8] sm:$0xff]  ;;  %v1605_v27 = vpack.c.bf16 %v50_v19, %v49_v18  ;;  %v1609_v29 = vpack.c.bf16 %v68_v24, %v67_v23 }
  0x1a   :  { %1237 = vmatprep.subr.bf16.mxu1 %v1600_v17  ;;  %v1607_v28 = vpack.c.bf16 %v82_v22, %v81_v20  ;;  %v1611_v30 = vpack.c.bf16 %v100_v26, %v99_v25  ;;  %v51_v31 = vld [vmem:[#allocation5 + $0x20] sm:$0xff]  ;;  %v52_v32 = vld [vmem:[#allocation5 + $0x28] sm:$0xff]  ;;  %v69_v35 = vld [vmem:[#allocation5 + $0xb0] sm:$0xff] }
  0x1b   :  { %v83_v33 = vld [vmem:[#allocation5 + $0x120] sm:$0xff]  ;;  %v84_v34 = vld [vmem:[#allocation5 + $0x128] sm:$0xff]  ;;  %v70_v36 = vld [vmem:[#allocation5 + $0xb8] sm:$0xff]  ;;  %v1617_v39 = vpack.c.bf16 %v52_v32, %v51_v31 }
  0x1c   :  { %v101_v37 = vld [vmem:[#allocation5 + $0x1b0] sm:$0xff]  ;;  %v102_v38 = vld [vmem:[#allocation5 + $0x1b8] sm:$0xff]  ;;  %v1619_v40 = vpack.c.bf16 %v84_v34, %v83_v33  ;;  %v1621_v41 = vpack.c.bf16 %v70_v36, %v69_v35  ;;  %v71_v48 = vld [vmem:[#allocation5 + $0xc0] sm:$0xff] }
  0x1d   :  { %v1623_v42 = vpack.c.bf16 %v102_v38, %v101_v37  ;;  %v53_v43 = vld [vmem:[#allocation5 + $0x30] sm:$0xff]  ;;  %v54_v44 = vld [vmem:[#allocation5 + $0x38] sm:$0xff]  ;;  %v72_v49 = vld [vmem:[#allocation5 + $0xc8] sm:$0xff] }
  0x1e   :  { %v85_v45 = vld [vmem:[#allocation5 + $0x130] sm:$0xff]  ;;  %v86_v47 = vld [vmem:[#allocation5 + $0x138] sm:$0xff]  ;;  %v103_v50 = vld [vmem:[#allocation5 + $0x1c0] sm:$0xff]  ;;  %v1636_v52 = vpack.c.bf16 %v54_v44, %v53_v43  ;;  %v1640_v54 = vpack.c.bf16 %v72_v49, %v71_v48 }
  0x1f   :  { %v1631_v46 = vld [vmem:[%s1900_s0] sm:$0xff]  ;;  %v104_v51 = vld [vmem:[#allocation5 + $0x1c8] sm:$0xff]  ;;  %v1638_v53 = vpack.c.bf16 %v86_v47, %v85_v45  ;;  %v55_v56 = vld [vmem:[#allocation5 + $0x40] sm:$0xff] }
  0x20   :  { %1207 = vmatpush3.bf16.xpose.msra.mxu0 %v1605_v27  ;;  %956 = vmatprep.mubr.f32.mxu0 %v1631_v46  ;;  %v1642_v55 = vpack.c.bf16 %v104_v51, %v103_v50  ;;  %v56_v57 = vld [vmem:[#allocation5 + $0x48] sm:$0xff]  ;;  %v87_v58 = vld [vmem:[#allocation5 + $0x140] sm:$0xff]  ;;  %v73_v60 = vld [vmem:[#allocation5 + $0xd0] sm:$0xff] }
  0x21   :  { %1239 = vmatpush3.bf16.xpose.msra.mxu1 %v1607_v28  ;;  %1209 = vmatprep.subr.bf16.mxu0 %v1609_v29  ;;  %v88_v59 = vld [vmem:[#allocation5 + $0x148] sm:$0xff]  ;;  %v74_v61 = vld [vmem:[#allocation5 + $0xd8] sm:$0xff]  ;;  %v105_v62 = vld [vmem:[#allocation5 + $0x1d0] sm:$0xff]  ;;  %v1648_v0 = vpack.c.bf16 %v56_v57, %v55_v56 }
  0x22   :  { %1241 = vmatprep.subr.bf16.mxu1 %v1611_v30  ;;  %990 = vmatprep.mubr.f32.mxu1 %v1631_v46  ;;  %v106_v63 = vld [vmem:[#allocation5 + $0x1d8] sm:$0xff]  ;;  %v1650_v1 = vpack.c.bf16 %v88_v59, %v87_v58  ;;  %v1652_v2 = vpack.c.bf16 %v74_v61, %v73_v60  ;;  %v57_v5 = vld [vmem:[#allocation5 + $0x50] sm:$0xff]  ;;  %v75_v11 = vld [vmem:[#allocation5 + $0xe0] sm:$0xff] }
  0x23   :  { %v1654_v4 = vpack.c.bf16 %v106_v63, %v105_v62  ;;  %v58_v6 = vld [vmem:[#allocation5 + $0x58] sm:$0xff]  ;;  %v89_v9 = vld [vmem:[#allocation5 + $0x150] sm:$0xff]  ;;  %v76_v13 = vld [vmem:[#allocation5 + $0xe8] sm:$0xff] }
  0x24   :  { %v90_v10 = vld [vmem:[#allocation5 + $0x158] sm:$0xff]  ;;  %v107_v14 = vld [vmem:[#allocation5 + $0x1e0] sm:$0xff]  ;;  %v108_v15 = vld [vmem:[#allocation5 + $0x1e8] sm:$0xff]  ;;  %v1660_v18 = vpack.c.bf16 %v58_v6, %v57_v5  ;;  %v1664_v20 = vpack.c.bf16 %v76_v13, %v75_v11 }
  0x25   :  { %v1662_v19 = vpack.c.bf16 %v90_v10, %v89_v9  ;;  %v1666_v21 = vpack.c.bf16 %v108_v15, %v107_v14  ;;  %v175_v22 = vld [vmem:[%s1903_s3] sm:$0xff]  ;;  %v59_v23 = vld [vmem:[#allocation5 + $0x60] sm:$0xff]  ;;  %v60_v24 = vld [vmem:[#allocation5 + $0x68] sm:$0xff] }
  0x26   :  { %462 = vperm.xlu0 %1463, %v175_v22   ;;  %v91_v25 = vld [vmem:[#allocation5 + $0x160] sm:$0xff]  ;;  %v473_v26 = vld [vmem:[%s1904_s4] sm:$0xff]  ;;  %v92_v31 = vld [vmem:[#allocation5 + $0x168] sm:$0xff]  ;;  %v1678_v36 = vpack.c.bf16 %v60_v24, %v59_v23 }
  0x27   :  { %v77_v32 = vld [vmem:[#allocation5 + $0xf0] sm:$0xff]  ;;  %v78_v33 = vld [vmem:[#allocation5 + $0xf8] sm:$0xff]  ;;  %v1680_v37 = vpack.c.bf16 %v92_v31, %v91_v25  ;;  %v127_v49 = vld [vmem:[#allocation5 + $0x280] sm:$0xff] }
  0x28   :  { %1211 = vmatpush3.bf16.xpose.msra.mxu0 %v1617_v39  ;;  %v109_v34 = vld [vmem:[#allocation5 + $0x1f0] sm:$0xff]  ;;  %v110_v35 = vld [vmem:[#allocation5 + $0x1f8] sm:$0xff]  ;;  %v1682_v38 = vpack.c.bf16 %v78_v33, %v77_v32  ;;  %v128_v50 = vld [vmem:[#allocation5 + $0x288] sm:$0xff] }
  0x29   :  { %1243 = vmatpush3.bf16.xpose.msra.mxu1 %v1619_v40  ;;  %1213 = vmatprep.subr.bf16.mxu0 %v1621_v41  ;;  %v1684_v43 = vpack.c.bf16 %v110_v35, %v109_v34  ;;  %v61_v44 = vld [vmem:[#allocation5 + $0x70] sm:$0xff]  ;;  %v62_v45 = vld [vmem:[#allocation5 + $0x78] sm:$0xff]  ;;  %v159_v51 = vld [vmem:[#allocation5 + $0x380] sm:$0xff]  ;;  %v1694_v59 = vpack.c.bf16 %v128_v50, %v127_v49 }
  0x2a   :  { %1245 = vmatprep.subr.bf16.mxu1 %v1623_v42  ;;  %477 = vperm.xlu0 %1463, %v473_v26   ;;  %v93_v47 = vld [vmem:[#allocation5 + $0x170] sm:$0xff]  ;;  %v94_v48 = vld [vmem:[#allocation5 + $0x178] sm:$0xff]  ;;  %v160_v56 = vld [vmem:[#allocation5 + $0x388] sm:$0xff]  ;;  %v1690_v57 = vpack.c.bf16 %v62_v45, %v61_v44 }
  0x2b   :  { %v1692_v58 = vpack.c.bf16 %v94_v48, %v93_v47  ;;  %v1696_v60 = vpack.c.bf16 %v160_v56, %v159_v51  ;;  %v111_v61 = vld [vmem:[#allocation5 + $0x200] sm:$0xff]  ;;  %v112_v62 = vld [vmem:[#allocation5 + $0x208] sm:$0xff]  ;;  %v129_v6 = vld [vmem:[#allocation5 + $0x290] sm:$0xff] }
  0x2c   :  { %v143_v63 = vld [vmem:[#allocation5 + $0x300] sm:$0xff]  ;;  %v144_v5 = vld [vmem:[#allocation5 + $0x308] sm:$0xff]  ;;  %v130_v9 = vld [vmem:[#allocation5 + $0x298] sm:$0xff]  ;;  %v1702_v13 = vpack.c.bf16 %v112_v62, %v111_v61 }
  0x2d   :  { %v161_v10 = vld [vmem:[#allocation5 + $0x390] sm:$0xff]  ;;  %v162_v11 = vld [vmem:[#allocation5 + $0x398] sm:$0xff]  ;;  %v1704_v14 = vpack.c.bf16 %v144_v5, %v143_v63  ;;  %v1706_v15 = vpack.c.bf16 %v130_v9, %v129_v6  ;;  %v131_v31 = vld [vmem:[#allocation5 + $0x2a0] sm:$0xff] }
  0x2e   :  { %v1708_v22 = vpack.c.bf16 %v162_v11, %v161_v10  ;;  %v113_v23 = vld [vmem:[#allocation5 + $0x210] sm:$0xff]  ;;  %v114_v24 = vld [vmem:[#allocation5 + $0x218] sm:$0xff]  ;;  %v132_v32 = vld [vmem:[#allocation5 + $0x2a8] sm:$0xff] }
  0x2f   :  { %v145_v25 = vld [vmem:[#allocation5 + $0x310] sm:$0xff]  ;;  %v146_v26 = vld [vmem:[#allocation5 + $0x318] sm:$0xff]  ;;  %v163_v33 = vld [vmem:[#allocation5 + $0x3a0] sm:$0xff]  ;;  %v1718_v35 = vpack.c.bf16 %v114_v24, %v113_v23  ;;  %v1722_v45 = vpack.c.bf16 %v132_v32, %v131_v31 }
  0x30   :  { %1215 = vmatpush3.bf16.xpose.msra.mxu0 %v1636_v52  ;;  %v164_v34 = vld [vmem:[#allocation5 + $0x3a8] sm:$0xff]  ;;  %v1720_v44 = vpack.c.bf16 %v146_v26, %v145_v25  ;;  %v115_v48 = vld [vmem:[#allocation5 + $0x220] sm:$0xff]  ;;  %v133_v56 = vld [vmem:[#allocation5 + $0x2b0] sm:$0xff] }
  0x31   :  { %1247 = vmatpush3.bf16.xpose.msra.mxu1 %v1638_v53  ;;  %1217 = vmatprep.subr.bf16.mxu0 %v1640_v54  ;;  %v1724_v47 = vpack.c.bf16 %v164_v34, %v163_v33  ;;  %v116_v49 = vld [vmem:[#allocation5 + $0x228] sm:$0xff]  ;;  %v147_v50 = vld [vmem:[#allocation5 + $0x320] sm:$0xff]  ;;  %v134_v61 = vld [vmem:[#allocation5 + $0x2b8] sm:$0xff] }
  0x32   :  { %1249 = vmatprep.subr.bf16.mxu1 %v1642_v55  ;;  %v148_v51 = vld [vmem:[#allocation5 + $0x328] sm:$0xff]  ;;  %v165_v62 = vld [vmem:[#allocation5 + $0x3b0] sm:$0xff]  ;;  %v166_v63 = vld [vmem:[#allocation5 + $0x3b8] sm:$0xff]  ;;  %v1730_v5 = vpack.c.bf16 %v116_v49, %v115_v48  ;;  %v1734_v9 = vpack.c.bf16 %v134_v61, %v133_v56 }
  0x33   :  { %v1732_v6 = vpack.c.bf16 %v148_v51, %v147_v50  ;;  %v1736_v10 = vpack.c.bf16 %v166_v63, %v165_v62  ;;  %v117_v11 = vld [vmem:[#allocation5 + $0x230] sm:$0xff]  ;;  %v118_v23 = vld [vmem:[#allocation5 + $0x238] sm:$0xff]  ;;  %v135_v26 = vld [vmem:[#allocation5 + $0x2c0] sm:$0xff] }
  0x34   :  { %v149_v24 = vld [vmem:[#allocation5 + $0x330] sm:$0xff]  ;;  %v150_v25 = vld [vmem:[#allocation5 + $0x338] sm:$0xff]  ;;  %v136_v31 = vld [vmem:[#allocation5 + $0x2c8] sm:$0xff]  ;;  %v1742_v34 = vpack.c.bf16 %v118_v23, %v117_v11 }
  0x35   :  { %v167_v32 = vld [vmem:[#allocation5 + $0x3c0] sm:$0xff]  ;;  %v168_v33 = vld [vmem:[#allocation5 + $0x3c8] sm:$0xff]  ;;  %v1744_v48 = vpack.c.bf16 %v150_v25, %v149_v24  ;;  %v1746_v49 = vpack.c.bf16 %v136_v31, %v135_v26  ;;  %v137_v63 = vld [vmem:[#allocation5 + $0x2d0] sm:$0xff] }
  0x36   :  { %v1748_v50 = vpack.c.bf16 %v168_v33, %v167_v32  ;;  %v119_v51 = vld [vmem:[#allocation5 + $0x240] sm:$0xff]  ;;  %v120_v56 = vld [vmem:[#allocation5 + $0x248] sm:$0xff]  ;;  %v138_v11 = vld [vmem:[#allocation5 + $0x2d8] sm:$0xff] }
  0x37   :  { %1918 = vst [vmem:[#allocation11_spill] sm:$0xff] %v1744_v48  ;;  %1919 = vst [vmem:[#allocation12_spill] sm:$0xff] %v1746_v49  ;;  %v151_v61 = vld [vmem:[#allocation5 + $0x340] sm:$0xff]  ;;  %v152_v62 = vld [vmem:[#allocation5 + $0x348] sm:$0xff]  ;;  %v1754_v25 = vpack.c.bf16 %v120_v56, %v119_v51  ;;  %v1758_v31 = vpack.c.bf16 %v138_v11, %v137_v63 }
  0x38   :  { %1219 = vmatpush3.bf16.xpose.msra.mxu0 %v1648_v0  ;;  %1920 = vst [vmem:[#allocation13_spill] sm:$0xff] %v1748_v50  ;;  %v169_v23 = vld [vmem:[#allocation5 + $0x3d0] sm:$0xff]  ;;  %v170_v24 = vld [vmem:[#allocation5 + $0x3d8] sm:$0xff]  ;;  %v1756_v26 = vpack.c.bf16 %v152_v62, %v151_v61  ;;  %v139_v51 = vld [vmem:[#allocation5 + $0x2e0] sm:$0xff] }
  0x39   :  { %1251 = vmatpush3.bf16.xpose.msra.mxu1 %v1650_v1  ;;  %1221 = vmatprep.subr.bf16.mxu0 %v1652_v2  ;;  %1921 = vst [vmem:[#allocation14_spill] sm:$0xff] %v1754_v25  ;;  %1923 = vst [vmem:[#allocation16_spill] sm:$0xff] %v1758_v31  ;;  %v1760_v32 = vpack.c.bf16 %v170_v24, %v169_v23  ;;  %v121_v33 = vld [vmem:[#allocation5 + $0x250] sm:$0xff]  ;;  %v140_v56 = vld [vmem:[#allocation5 + $0x2e8] sm:$0xff] }
  0x3a   :  { %1253 = vmatprep.subr.bf16.mxu1 %v1654_v4  ;;  %1922 = vst [vmem:[#allocation15_spill] sm:$0xff] %v1756_v26  ;;  %v171_v61 = vld [vmem:[#allocation5 + $0x3e0] sm:$0xff]  ;;  %v172_v62 = vld [vmem:[#allocation5 + $0x3e8] sm:$0xff]  ;;  %v1770_v23 = vpack.c.bf16 %v140_v56, %v139_v51 }
  0x3b   :  { %1924 = vst [vmem:[#allocation17_spill] sm:$0xff] %v1760_v32  ;;  %v1772_v24 = vpack.c.bf16 %v172_v62, %v171_v61 }
  0x3c   :  { %1927 = vst [vmem:[#allocation20_spill] sm:$0xff] %v1770_v23 }
  0x3d   :  { %1928 = vst [vmem:[#allocation21_spill] sm:$0xff] %v1772_v24 }
  0x40   :  { %1223 = vmatpush3.bf16.xpose.msra.mxu0 %v1660_v18 }
  0x41   :  { %1255 = vmatpush3.bf16.xpose.msra.mxu1 %v1662_v19  ;;  %1225 = vmatprep.subr.bf16.mxu0 %v1664_v20 }
  0x42   :  { %1257 = vmatprep.subr.bf16.mxu1 %v1666_v21 }
  0x48   :  { %1227 = vmatpush3.bf16.xpose.msra.mxu0 %v1678_v36 }
  0x49   :  { %1259 = vmatpush3.bf16.xpose.msra.mxu1 %v1680_v37  ;;  %1229 = vmatprep.subr.bf16.mxu0 %v1682_v38 }
  0x4a   :  { %1261 = vmatprep.subr.bf16.mxu1 %v1684_v43 }
  0x50   :  { %1231 = vmatpush3.bf16.xpose.msra.mxu0 %v1690_v57 }
  0x51   :  { %1263 = vmatpush3.bf16.xpose.msra.mxu1 %v1692_v58  ;;  %1265 = vmatprep.subr.bf16.mxu0 %v1694_v59 }
  0x52   :  { %1297 = vmatprep.subr.bf16.mxu1 %v1696_v60 }
  0x57   :  { %957 = vmatmul.mubr.f32.vlgmr.msra.gmra.mrb[0].mxu0 %v1631_v46 }
  0x58   :  { %991 = vmatmul.mubr.f32.vlgmr.msra.gmra.mrb[0].mxu1 %v1631_v46  ;;  %1267 = vmatpush3.bf16.xpose.msra.mxu0 %v1702_v13 }
  0x59   :  { %1299 = vmatpush3.bf16.xpose.msra.mxu1 %v1704_v14  ;;  %1269 = vmatprep.subr.bf16.mxu0 %v1706_v15 }
  0x5a   :  { %1301 = vmatprep.subr.bf16.mxu1 %v1708_v22  ;;  %1024 = vmatprep.mubr.f32.mxu0 %v1631_v46 }
  0x5b   :  { %1058 = vmatprep.mubr.f32.mxu1 %v1631_v46 }
  0x60   :  { %1271 = vmatpush3.bf16.xpose.msra.mxu0 %v1718_v35 }
  0x61   :  { %1303 = vmatpush3.bf16.xpose.msra.mxu1 %v1720_v44  ;;  %1273 = vmatprep.subr.bf16.mxu0 %v1722_v45 }
  0x62   :  { %1305 = vmatprep.subr.bf16.mxu1 %v1724_v47 }
  0x68   :  { %1275 = vmatpush3.bf16.xpose.msra.mxu0 %v1730_v5 }
  0x69   :  { %1307 = vmatpush3.bf16.xpose.msra.mxu1 %v1732_v6  ;;  %1277 = vmatprep.subr.bf16.mxu0 %v1734_v9 }
  0x6a   :  { %1309 = vmatprep.subr.bf16.mxu1 %v1736_v10 }
  0x70   :  { %1279 = vmatpush3.bf16.xpose.msra.mxu0 %v1742_v34 }
  0x71   :  { %1311 = vmatpush3.bf16.xpose.msra.mxu1 %v1744_v48  ;;  %1281 = vmatprep.subr.bf16.mxu0 %v1746_v49  ;;  %v153_v48 = vld [vmem:[#allocation5 + $0x350] sm:$0xff]  ;;  %v154_v49 = vld [vmem:[#allocation5 + $0x358] sm:$0xff] }
  0x72   :  { %1313 = vmatprep.subr.bf16.mxu1 %v1748_v50  ;;  %v122_v50 = vld [vmem:[#allocation5 + $0x258] sm:$0xff]  ;;  %v1768_v11 = vpack.c.bf16 %v154_v49, %v153_v48  ;;  %v173_v48 = vld [vmem:[#allocation5 + $0x3f0] sm:$0xff] }
  0x73   :  { %v1766_v63 = vpack.c.bf16 %v122_v50, %v121_v33  ;;  %v141_v50 = vld [vmem:[#allocation5 + $0x2f0] sm:$0xff]  ;;  %v142_v33 = vld [vmem:[#allocation5 + $0x2f8] sm:$0xff] }
  0x74   :  { %1926 = vst [vmem:[#allocation19_spill] sm:$0xff] %v1768_v11  ;;  %v174_v49 = vld [vmem:[#allocation5 + $0x3f8] sm:$0xff]  ;;  %v1782_v61 = vpack.c.bf16 %v142_v33, %v141_v50 }
  0x75   :  { %1925 = vst [vmem:[#allocation18_spill] sm:$0xff] %v1766_v63  ;;  %v1784_v62 = vpack.c.bf16 %v174_v49, %v173_v48 }
  0x78   :  { %1283 = vmatpush3.bf16.xpose.msra.mxu0 %v1754_v25  ;;  %v156_v25 = vld [vmem:[#allocation5 + $0x368] sm:$0xff] }
  0x79   :  { %1315 = vmatpush3.bf16.xpose.msra.mxu1 %v1756_v26  ;;  %1285 = vmatprep.subr.bf16.mxu0 %v1758_v31  ;;  %v124_v26 = vld [vmem:[#allocation5 + $0x268] sm:$0xff]  ;;  %v155_v31 = vld [vmem:[#allocation5 + $0x360] sm:$0xff] }
  0x7a   :  { %1317 = vmatprep.subr.bf16.mxu1 %v1760_v32  ;;  %v123_v32 = vld [vmem:[#allocation5 + $0x260] sm:$0xff]  ;;  %v1780_v56 = vpack.c.bf16 %v156_v25, %v155_v31 }
  0x7b   :  { %v1778_v51 = vpack.c.bf16 %v124_v26, %v123_v32 }
  0x80   :  { %1287 = vmatpush3.bf16.xpose.msra.mxu0 %v1766_v63  ;;  %v158_v63 = vld [vmem:[#allocation5 + $0x378] sm:$0xff] }
  0x81   :  { %1319 = vmatpush3.bf16.xpose.msra.mxu1 %v1768_v11  ;;  %1289 = vmatprep.subr.bf16.mxu0 %v1770_v23  ;;  %v126_v11 = vld [vmem:[#allocation5 + $0x278] sm:$0xff]  ;;  %v157_v23 = vld [vmem:[#allocation5 + $0x370] sm:$0xff] }
  0x82   :  { %1321 = vmatprep.subr.bf16.mxu1 %v1772_v24  ;;  %v125_v24 = vld [vmem:[#allocation5 + $0x270] sm:$0xff]  ;;  %v1792_v25 = vpack.c.bf16 %v158_v63, %v157_v23 }
  0x83   :  { %v1790_v26 = vpack.c.bf16 %v126_v11, %v125_v24 }
  0x88   :  { %1291 = vmatpush3.bf16.xpose.msra.mxu0 %v1778_v51 }
  0x89   :  { %1323 = vmatpush3.bf16.xpose.msra.mxu1 %v1780_v56  ;;  %1293 = vmatprep.subr.bf16.mxu0 %v1782_v61 }
  0x8a   :  { %1325 = vmatprep.subr.bf16.mxu1 %v1784_v62 }
  0x90   :  { %1295 = vmatpush3.bf16.xpose.msra.mxu0 %v1790_v26 }
  0x91   :  { %1327 = vmatpush3.bf16.xpose.msra.mxu1 %v1792_v25  ;;  %1329 = vmatprep.subr.bf16.mxu0 %v1587_v3  ;;  %v1537_v3 = vmov -inf  }
  0x92   :  { %1361 = vmatprep.subr.bf16.mxu1 %v1589_v7  ;;  %43 = vst.msk [vmem:[#allocation2] sm:$0xff] %vm42_vm0, %v1537_v3 }
  0x97   :  { %1025 = vmatmul.mubr.f32.vlgmr.msra.gmra.mrb[2].mxu0 %v1631_v46 }
  0x98   :  { %1059 = vmatmul.mubr.f32.vlgmr.msra.gmra.mrb[2].mxu1 %v1631_v46  ;;  %1331 = vmatpush3.bf16.msra.mxu0 %v1591_v8 }
  0x99   :  { %1363 = vmatpush3.bf16.msra.mxu1 %v1594_v12  ;;  %1333 = vmatprep.subr.bf16.mxu0 %v1598_v16 }
  0x9a   :  { %1365 = vmatprep.subr.bf16.mxu1 %v1600_v17  ;;  %v481_v17 = vlaneseq }
  0x9c   :  { %1335 = vmatpush3.bf16.msra.mxu0 %v1605_v27  ;;  %v482_v27 = vshrl.u32 %v481_v17, 7 }
  0x9d   :  { %1367 = vmatpush3.bf16.msra.mxu1 %v1607_v28  ;;  %1337 = vmatprep.subr.bf16.mxu0 %v1609_v29 }
  0x9e   :  { %1369 = vmatprep.subr.bf16.mxu1 %v1611_v30  ;;  %v483_v29 = vsub.s32 0, %v482_v27  ;;  %v474_v30 = vld [vmem:[%s1902_s2] sm:$0xff] }
  0xa0   :  { %1339 = vmatpush3.bf16.msra.mxu0 %v1617_v39  ;;  %v487_v39 = vsub.s32 1, %v482_v27 }
  0xa1   :  { %1371 = vmatpush3.bf16.msra.mxu1 %v1619_v40  ;;  %1341 = vmatprep.subr.bf16.mxu0 %v1621_v41  ;;  %v491_v40 = vsub.s32 2, %v482_v27  ;;  %v495_v41 = vsub.s32 3, %v482_v27 }
  0xa2   :  { %1373 = vmatprep.subr.bf16.mxu1 %v1623_v42  ;;  %v499_v42 = vsub.s32 4, %v482_v27 }
  0xa4   :  { %1343 = vmatpush3.bf16.msra.mxu0 %v1636_v52  ;;  %v507_v52 = vsub.s32 6, %v482_v27 }
  0xa5   :  { %1375 = vmatpush3.bf16.msra.mxu1 %v1638_v53  ;;  %1345 = vmatprep.subr.bf16.mxu0 %v1640_v54  ;;  %v1833_v28 = vpop.permute.xlu0 %462  ;;  %v503_v53 = vsub.s32 5, %v482_v27  ;;  %v511_v54 = vsub.s32 7, %v482_v27 }
  0xa6   :  { %1377 = vmatprep.subr.bf16.mxu1 %v1642_v55  ;;  %v484_v55 = vrot.slane %v474_v30, %v483_v29 }
  0xa8   :  { %1347 = vmatpush3.bf16.msra.mxu0 %v1648_v0 }
  0xa9   :  { %1379 = vmatpush3.bf16.msra.mxu1 %v1650_v1  ;;  %1349 = vmatprep.subr.bf16.mxu0 %v1652_v2  ;;  %v478_v0 = vpop.permute.xlu0 %477  ;;  %v488_v1 = vrot.slane %v474_v30, %v487_v39  ;;  %v492_v2 = vrot.slane %v474_v30, %v491_v40 }
  0xaa   :  { %1381 = vmatprep.subr.bf16.mxu1 %v1654_v4  ;;  %v496_v4 = vrot.slane %v474_v30, %v495_v41 }
  0xac   :  { %1351 = vmatpush3.bf16.msra.mxu0 %v1660_v18  ;;  %v500_v18 = vrot.slane %v474_v30, %v499_v42  ;;  %v524_v31 = vmul.f32 %v496_v4, %v478_v0 }
  0xad   :  { %1383 = vmatpush3.bf16.msra.mxu1 %v1662_v19  ;;  %1353 = vmatprep.subr.bf16.mxu0 %v1664_v20  ;;  %v508_v19 = vrot.slane %v474_v30, %v507_v52  ;;  %v504_v20 = vrot.slane %v474_v30, %v503_v53 }
  0xae   :  { %1385 = vmatprep.subr.bf16.mxu1 %v1666_v21  ;;  %v525_v63 = vmul.f32 %v500_v18, %v478_v0 }
  0xaf   :  { %v527_v50 = vmul.f32 %v508_v19, %v478_v0  ;;  %v526_v48 = vmul.f32 %v504_v20, %v478_v0 }
  0xb0   :  { %1355 = vmatpush3.bf16.msra.mxu0 %v1678_v36  ;;  %v512_v36 = vrot.slane %v474_v30, %v511_v54 }
  0xb1   :  { %1387 = vmatpush3.bf16.msra.mxu1 %v1680_v37  ;;  %1357 = vmatprep.subr.bf16.mxu0 %v1682_v38  ;;  %v521_v37 = vmul.f32 %v484_v55, %v478_v0 }
  0xb2   :  { %1389 = vmatprep.subr.bf16.mxu1 %v1684_v43 }
  0xb4   :  { %1359 = vmatpush3.bf16.msra.mxu0 %v1690_v57  ;;  %v522_v57 = vmul.f32 %v488_v1, %v478_v0  ;;  %v1538_v1 = vmov 0.0  }
  0xb5   :  { %1391 = vmatpush3.bf16.msra.mxu1 %v1692_v58  ;;  %1393 = vmatprep.subr.bf16.mxu0 %v1694_v59  ;;  %v523_v59 = vmul.f32 %v492_v2, %v478_v0  ;;  %44 = vst.msk [vmem:[#allocation3] sm:$0xff] %vm42_vm0, %v1538_v1  ;;  %v537_v2 = vld [vmem:[#allocation2] sm:$0xff] }
  0xb6   :  { %1425 = vmatprep.subr.bf16.mxu1 %v1696_v60 }
 0x12a   :  { %v242_v7 = vpop.f32.mrb[0].mxu0 }
 0x12b   :  { %v313_v8 = vpop.f32.mrb[0].mxu1  ;;  %v244_v12 = vpop.f32.mrb[1].mxu0  ;;  %v465_v21 = vmul.f32 %v1833_v28, %v242_v7 }
 0x12c   :  { %v315_v16 = vpop.f32.mrb[1].mxu1  ;;  %v467_v38 = vmul.f32 %v1833_v28, %v313_v8  ;;  %v466_v43 = vmul.f32 %v1833_v28, %v244_v12  ;;  %v528_v8 = vmul.f32 %v512_v36, %v478_v0 }
 0x12d   :  { %v468_v60 = vmul.f32 %v1833_v28, %v315_v16  ;;  %v529_v12 = vadd.f32 %v521_v37, %v465_v21 }
 0x12e   :  { %v530_v17 = vadd.f32 %v522_v57, %v466_v43  ;;  %v531_v29 = vadd.f32 %v523_v59, %v467_v38 }
 0x12f   :  { %v532_v30 = vadd.f32 %v524_v31, %v468_v60 }
 0x16a   :  { %v384_v58 = vpop.f32.mrb[2].mxu0 }
 0x16b   :  { %v469_v32 = vmul.f32 %v1833_v28, %v384_v58  ;;  %v455_v11 = vpop.f32.mrb[2].mxu1  ;;  %v386_v23 = vpop.f32.mrb[3].mxu0 }
 0x16c   :  { %v471_v24 = vmul.f32 %v1833_v28, %v455_v11  ;;  %v470_v33 = vmul.f32 %v1833_v28, %v386_v23  ;;  %v457_v49 = vpop.f32.mrb[3].mxu1 }
 0x16d   :  { %v533_v3 = vadd.f32 %v525_v63, %v469_v32  ;;  %v472_v7 = vmul.f32 %v1833_v28, %v457_v49 }
 0x16e   :  { %v535_v16 = vadd.f32 %v527_v50, %v471_v24  ;;  %v534_v27 = vadd.f32 %v526_v48, %v470_v33 }
 0x16f   :  { %v536_v39 = vadd.f32 %v528_v8, %v472_v7  ;;  %v538_v40 = vmax.f32 %v529_v12, %v533_v3 }
 0x170   :  { %v539_v41 = vmax.f32 %v530_v17, %v534_v27  ;;  %v540_v42 = vmax.f32 %v531_v29, %v535_v16 }
 0x171   :  { %v541_v52 = vmax.f32 %v532_v30, %v536_v39 }
 0x172   :  { %v542_v53 = vmax.f32 %v538_v40, %v539_v41  ;;  %v1939_v40 = vld [vmem:[#allocation21_spill] sm:$0xff] }
 0x173   :  { %v543_v54 = vmax.f32 %v540_v42, %v541_v52  ;;  %v580_v41 = vld [vmem:[#allocation3] sm:$0xff] }
 0x175   :  { %v544_v55 = vmax.f32 %v542_v53, %v543_v54 }
 0x177   :  { %545 = vmax.xlane.f32.xlu1 %v544_v55 }
 0x204   :  { %v546_v0 = vpop.xlane.xlu1 %545 }
 0x205   :  { %v547_v4 = vmax.f32 %v537_v2, %v546_v0 }
 0x207   :  { %v548_v18 = vsub.f32 %v537_v2, %v547_v4  ;;  %883 = vst.msk [vmem:[#allocation2] sm:$0xff] %vm42_vm0, %v547_v4  ;;  %553 = vperm.xlu1 %1464, %v547_v4  }
 0x209   :  { %v549_v19 = vmul.f32 1.442695, %v548_v18 }
 0x20b   :  { %1465 = vpow2.f32 %v549_v19 }
 0x215   :  { %v1848_v20 = vpop.eup %1465 }
 0x216   :  { %597 = vperm.xlu1 %1464, %v1848_v20   ;;  %v581_v42 = vmul.f32 %v1848_v20, %v580_v41 }
 0x286   :  { %v554_v21 = vpop.permute.xlu1 %553 }
 0x287   :  { %v556_v36 = vsub.f32 %v529_v12, %v554_v21  ;;  %v557_v37 = vsub.f32 %v530_v17, %v554_v21  ;;  %v558_v38 = vsub.f32 %v531_v29, %v554_v21  ;;  %v559_v43 = vsub.f32 %v532_v30, %v554_v21 }
 0x288   :  { %v561_v57 = vsub.f32 %v534_v27, %v554_v21  ;;  %v563_v58 = vsub.f32 %v536_v39, %v554_v21  ;;  %v560_v63 = vsub.f32 %v533_v3, %v554_v21  ;;  %v562_v24 = vsub.f32 %v535_v16, %v554_v21 }
 0x289   :  { %v564_v59 = vmul.f32 1.442695, %v556_v36  ;;  %v566_v60 = vmul.f32 1.442695, %v557_v37  ;;  %v568_v31 = vmul.f32 1.442695, %v558_v38 }
 0x28a   :  { %v570_v32 = vmul.f32 1.442695, %v559_v43  ;;  %v574_v11 = vmul.f32 1.442695, %v561_v57  ;;  %v578_v23 = vmul.f32 1.442695, %v563_v58 }
 0x28b   :  { %1467 = vpow2.f32 %v564_v59  ;;  %v572_v50 = vmul.f32 1.442695, %v560_v63  ;;  %v576_v33 = vmul.f32 1.442695, %v562_v24 }
 0x28c   :  { %1469 = vpow2.f32 %v566_v60 }
 0x28d   :  { %1471 = vpow2.f32 %v568_v31 }
 0x28e   :  { %1473 = vpow2.f32 %v570_v32 }
 0x28f   :  { %1475 = vpow2.f32 %v574_v11 }
 0x290   :  { %1477 = vpow2.f32 %v578_v23 }
 0x291   :  { %1479 = vpow2.f32 %v572_v50 }
 0x292   :  { %1481 = vpow2.f32 %v576_v33 }
 0x295   :  { %v1468_v48 = vpop.eup %1467  ;;  %v598_v58 = vpop.permute.xlu1 %597 }
 0x296   :  { %v1470_v49 = vpop.eup %1469  ;;  %v600_v59 = vmul.f32 0.0, %v598_v58 }
 0x297   :  { %v1472_v7 = vpop.eup %1471  ;;  %665 = vmatprep.mubr.f32.mxu0 %v1470_v49  ;;  %v582_v8 = vadd.f32 %v1470_v49, %v1468_v48 }
 0x298   :  { %v1474_v12 = vpop.eup %1473  ;;  %666 = vmatmul.mubr.f32.vlgmr.msra.gmra.mrb[4].mxu0 %v1468_v48 }
 0x299   :  { %v1476_v3 = vpop.eup %1475  ;;  %735 = vmatprep.mubr.f32.mxu1 %v1474_v12  ;;  %1395 = vmatpush3.bf16.msra.mxu0 %v1702_v13  ;;  %v583_v17 = vadd.f32 %v1472_v7, %v582_v8 }
 0x29a   :  { %v1478_v27 = vpop.eup %1477  ;;  %736 = vmatmul.mubr.f32.vlgmr.msra.gmra.mrb[4].mxu1 %v1472_v7  ;;  %805 = vmatprep.mubr.f32.mxu0 %v1476_v3 }
 0x29b   :  { %1427 = vmatpush3.bf16.msra.mxu1 %v1704_v14  ;;  %875 = vmatprep.mubr.f32.mxu1 %v1478_v27  ;;  %v584_v16 = vadd.f32 %v1474_v12, %v583_v17  ;;  %v1480_v29 = vpop.eup %1479 }
 0x29c   :  { %1397 = vmatprep.subr.bf16.mxu0 %v1706_v15  ;;  %1429 = vmatprep.subr.bf16.mxu1 %v1708_v22  ;;  %v1482_v39 = vpop.eup %1481  ;;  %v1929_v22 = vld [vmem:[#allocation12_spill] sm:$0xff] }
 0x29d   :  { %1399 = vmatpush3.bf16.msra.mxu0 %v1718_v35  ;;  %v585_v30 = vadd.f32 %v1480_v29, %v584_v16  ;;  %v1930_v35 = vld [vmem:[#allocation11_spill] sm:$0xff] }
 0x29e   :  { %1401 = vmatprep.subr.bf16.mxu0 %v1722_v45  ;;  %v1932_v45 = vld [vmem:[#allocation14_spill] sm:$0xff] }
 0x29f   :  { %1431 = vmatpush3.bf16.msra.mxu1 %v1720_v44  ;;  %v586_v13 = vadd.f32 %v1476_v3, %v585_v30  ;;  %v1931_v44 = vld [vmem:[#allocation13_spill] sm:$0xff] }
 0x2a0   :  { %1433 = vmatprep.subr.bf16.mxu1 %v1724_v47  ;;  %v1933_v47 = vld [vmem:[#allocation16_spill] sm:$0xff] }
 0x2a1   :  { %1403 = vmatpush3.bf16.msra.mxu0 %v1730_v5  ;;  %v587_v14 = vadd.f32 %v1482_v39, %v586_v13  ;;  %v1934_v5 = vld [vmem:[#allocation15_spill] sm:$0xff] }
 0x2a2   :  { %1405 = vmatprep.subr.bf16.mxu0 %v1734_v9  ;;  %v1935_v9 = vld [vmem:[#allocation17_spill] sm:$0xff] }
 0x2a3   :  { %1435 = vmatpush3.bf16.msra.mxu1 %v1732_v6  ;;  %v588_v15 = vadd.f32 %v1478_v27, %v587_v14  ;;  %v1936_v6 = vld [vmem:[#allocation18_spill] sm:$0xff] }
 0x2a4   :  { %1437 = vmatprep.subr.bf16.mxu1 %v1736_v10  ;;  %v1937_v10 = vld [vmem:[#allocation20_spill] sm:$0xff] }
 0x2a5   :  { %1407 = vmatpush3.bf16.msra.mxu0 %v1742_v34  ;;  %589 = vadd.xlane.f32.xlu0 %v588_v15  ;;  %v1938_v34 = vld [vmem:[#allocation19_spill] sm:$0xff] }
 0x2a6   :  { %1409 = vmatprep.subr.bf16.mxu0 %v1929_v22 }
 0x2a7   :  { %1439 = vmatpush3.bf16.msra.mxu1 %v1930_v35 }
 0x2a8   :  { %1441 = vmatprep.subr.bf16.mxu1 %v1931_v44 }
 0x2a9   :  { %1411 = vmatpush3.bf16.msra.mxu0 %v1932_v45 }
 0x2aa   :  { %1413 = vmatprep.subr.bf16.mxu0 %v1933_v47 }
 0x2ab   :  { %1443 = vmatpush3.bf16.msra.mxu1 %v1934_v5 }
 0x2ac   :  { %1445 = vmatprep.subr.bf16.mxu1 %v1935_v9 }
 0x2ad   :  { %1415 = vmatpush3.bf16.msra.mxu0 %v1936_v6 }
 0x2ae   :  { %1417 = vmatprep.subr.bf16.mxu0 %v1937_v10 }
 0x2af   :  { %1447 = vmatpush3.bf16.msra.mxu1 %v1938_v34 }
 0x2b0   :  { %1449 = vmatprep.subr.bf16.mxu1 %v1939_v40 }
 0x2b1   :  { %1419 = vmatpush3.bf16.msra.mxu0 %v1778_v51 }
 0x2b2   :  { %1421 = vmatprep.subr.bf16.mxu0 %v1782_v61 }
 0x2b3   :  { %1451 = vmatpush3.bf16.msra.mxu1 %v1780_v56 }
 0x2b4   :  { %1453 = vmatprep.subr.bf16.mxu1 %v1784_v62  ;;  %v900_v62 = vld [vmem:[%s1905_s5] sm:$0xff]  ;;  %s1539_s5 = smov [#allocation8]  }
 0x2b5   :  { %1423 = vmatpush3.bf16.msra.mxu0 %v1790_v26  ;;  %s915_s16 = sshll.u32 %s1539_s5, 4  ;;  %s916_s16 = int_to_ptr.vmem [resolvable:$true] %s915_s16 }
 0x2b6   :  { %s1507_s17 = scalar_lea.vmem %s916_s16, 128  ;;  %p1512_p9 = scmp.lt.s32.totalorder %s916_s16, %s916_s16 }
 0x2b7   :  { %1455 = vmatpush3.bf16.msra.mxu1 %v1792_v25  ;;  %p1508_p8 = scmp.ne.s32.totalorder %s916_s16, %s1507_s17  ;;  %p1513_p10 = scmp.lt.s32.totalorder %s1507_s17, %s1507_s17 }
 0x2b8   :  { %806 = vmatmul.mubr.f32.vlgmr.msra.gmra.mrb[6].mxu0 %v1480_v29 }
 0x2b9   :  { %p1514_p11 = por %p1513_p10, %p1512_p9 }
 0x2ba   :  { %876 = vmatmul.mubr.f32.vlgmr.msra.gmra.mrb[6].mxu1 %v1482_v39 }
 0x2bb   :  { %p1515_p12 = pnand %p1514_p11, %p1508_p8 }
 0x332   :  { %v590_v52 = vpop.xlane.xlu0 %589 }
 0x333   :  { %v591_v53 = vadd.f32 %v590_v52, %v581_v42 }
 0x335   :  { %593 = vst.msk [vmem:[#allocation3] sm:$0xff] %vm42_vm0, %v591_v53 }
 0x33c   :  { %v887_v51 = vld [vmem:[#allocation3] sm:$0xff] }
 0x33d   :  { %1483 = vrcp.f32 %v887_v51 }
 0x347   :  { %v1484_v61 = vpop.eup %1483 }
 0x348   :  { %v889_v54 = vmul.f32 %v1484_v61, %v887_v51 }
 0x34a   :  { %v890_v56 = vsub.f32 2.0, %v889_v54 }
 0x34c   :  { %v891_v55 = vmul.f32 %v1484_v61, %v890_v56 }
 0x34e   :  { %895 = vperm.xlu1 %1464, %v891_v55  }
 0x352   :  { %903 = vperm.xlu1 %1464, %v900_v62  }
 0x36b   :  { %v1092_v26 = vpop.f32.mrb[4].mxu0 }
 0x36c   :  { %v1093_v25 = vpop.f32.mrb[5].mxu0 }
 0x36d   :  { %v1127_v1 = vpop.f32.mrb[4].mxu1  ;;  %v1094_v2 = vadd.f32 %v1093_v25, %v1092_v26 }
 0x36e   :  { %v1128_v0 = vpop.f32.mrb[5].mxu1 }
 0x36f   :  { %v1129_v4 = vadd.f32 %v1128_v0, %v1127_v1 }
 0x371   :  { %v738_v18 = vadd.f32 %v1129_v4, %v1094_v2 }
 0x38b   :  { %v1162_v19 = vpop.f32.mrb[6].mxu0 }
 0x38c   :  { %v1163_v20 = vpop.f32.mrb[7].mxu0 }
 0x38d   :  { %v1197_v21 = vpop.f32.mrb[6].mxu1  ;;  %v1164_v36 = vadd.f32 %v1163_v20, %v1162_v19 }
 0x38e   :  { %v1198_v37 = vpop.f32.mrb[7].mxu1 }
 0x38f   :  { %v808_v38 = vadd.f32 %v1164_v36, %v738_v18  ;;  %v1199_v43 = vadd.f32 %v1198_v37, %v1197_v21 }
 0x391   :  { %v878_v57 = vadd.f32 %v1199_v43, %v808_v38 }
 0x393   :  { %v881_v60 = vadd.f32 %v878_v57, %v600_v59 }
 0x3cd   :  { %v896_v31 = vpop.permute.xlu1 %895 }
 0x3ce   :  { %v898_v32 = vmul.f32 %v896_v31, %v881_v60 }
 0x3d0   :  { %v899_v11 = vmul.f32 %v898_v32, %v1833_v28 }
 0x3d1   :  { %v904_v63 = vpop.permute.xlu1 %903 }
 0x3d2   :  { %v906_v23 = vmul.f32 %v904_v63, %v1631_v46 }
 0x3d4   :  { %v907_v24 = vsub.f32 %v899_v11, %v906_v23 }
 0x3d6   :  { %908 = vst [vmem:[#allocation8] sm:$0xff] %v907_v24 }
 0x3d7   :  { %1518 = shalt.err (!%p1515_p12)
}
 0x3d8   :  { %s1519_s20 = scalar_lea.hbm %s1906_s6, 128 }
 0x3d9   :  { %p1520_p13 = scmp.ne.s32.totalorder %s1906_s6, %s1519_s20  ;;  %p1523_p0 = scmp.lt.u32.totalorder %s1519_s20, %s1906_s6 }
 0x3db   :  { %p1525_p1 = pnand %p1523_p0, %p1520_p13 }
 0x3dd   :  { %1528 = shalt.err (!%p1525_p1)
}
 0x3de   :  { %918 = dma.vmem_to_hbm [thread:$0]  %s916_s16, 128, %s1906_s6, [#allocation7]  }
 0x3df   :  { %1531 = dma.done.wait [#allocation7], 128  }
 0x3e0   :  { %1532 = vsyncadd [#allocation7], 4294967168 }
 0x3e1   :  { %922 = vsyncpa [#allocation6], 1 }
 0x3e2   :  { %923 = vsyncpa [#allocation7], 1 }

</bundles_post_ra>
